<compile_context>
chip_gen: v5e
topology: v5e:2x2
jax: 0.10.0
libtpu: 0.0.40
codegen_flags: <defaults>
</compile_context>

<pallas_src>
import functools

import jax
import jax.numpy as jnp
from jax.experimental import pallas as pl
from jax.experimental.pallas import tpu as pltpu


# ----------------------------------------------------------------------------
# Pallas kernel: fused 1 -> H -> 1 MLP on a lane-dense (TB, LANE) tile
# ----------------------------------------------------------------------------
def _jastrow_kernel(x_ref, w1h_ref, b1h_ref, w2h_ref, c0_ref, o_ref, *, hidden):
    # x_ref  : (TB, LANE)  VMEM tile of (flattened, lane-dense) e-e distances
    # w1h_ref: (H,)  SMEM   0.5 * fc1 weight (in_features = 1)
    # b1h_ref: (H,)  SMEM   0.5 * fc1 bias
    # w2h_ref: (H,)  SMEM   0.5 * fc2 weight (out_features = 1)
    # c0_ref : (1,)  SMEM   b2 + 0.5 * sum(w2)   (folded constant)
    x = x_ref[...].astype(jnp.float32)                       # (TB, LANE)
    acc = jnp.full(x.shape, c0_ref[0], dtype=jnp.float32)    # folded bias term

    # Unrolled over hidden units: scalar-broadcast VPU mul/add + one EUP tanh
    # per hidden unit (sigmoid identity already folded into the weights).
    for k in range(hidden):
        acc = acc + w2h_ref[k] * jnp.tanh(x * w1h_ref[k] + b1h_ref[k])

    o_ref[...] = acc.astype(o_ref.dtype)


# ----------------------------------------------------------------------------
# Wrapper: lane-dense repack, VMEM-budget tiling, weights in SMEM
# ----------------------------------------------------------------------------
@functools.partial(jax.jit, static_argnames=("lane_width", "tile_bytes"))
def jastrow_forward(r, w1, b1, w2, b2, *, lane_width=512, tile_bytes=2 << 20):
    nbatch, npair = r.shape
    hidden = w1.shape[-1]
    total = nbatch * npair
    itemsize = jnp.dtype(r.dtype).itemsize

    # ---- lane-dense repack: (nbatch, npair) -> (rows_p, lane_width) --------
    # Pad with a finite value (0.0) so padded lanes never see garbage.
    rows = pl.cdiv(total, lane_width)
    rows_p = pl.cdiv(rows, 8) * 8                 # sublane multiple
    padded = rows_p * lane_width
    flat = jnp.pad(r.reshape(-1), (0, padded - total))
    x2d = flat.reshape(rows_p, lane_width)

    # ---- tile rows from a VMEM byte budget (~2 MiB per tile) ---------------
    # 4 buffers (2 in + 2 out, double-buffered) <= ~8 MiB on every generation.
    tb = max(8, (tile_bytes // (lane_width * itemsize)) // 8 * 8)
    if rows_p >= 16:
        # ensure >= 2 grid steps so v7x's two TensorCores both get work
        tb = min(tb, pl.cdiv(pl.cdiv(rows_p, 2), 8) * 8)
    tb = min(tb, rows_p)
    grid = (pl.cdiv(rows_p, tb),)

    # ---- fold the sigmoid constants into the (tiny) weight vectors ---------
    # w2.sigmoid(w1*x + b1) + b2
    #   = (b2 + 0.5*sum(w2)) + sum_k (0.5*w2[k]) * tanh(0.5*w1[k]*x + 0.5*b1[k])
    w1h = (0.5 * w1.reshape(-1)).astype(jnp.float32)
    b1h = (0.5 * b1.reshape(-1)).astype(jnp.float32)
    w2h = (0.5 * w2.reshape(-1)).astype(jnp.float32)
    c0 = (b2.reshape(-1)[:1] + 0.5 * jnp.sum(w2)).astype(jnp.float32)

    cost = pl.CostEstimate(
        flops=4 * hidden * total,           # 2 mul + 2 add per hidden unit
        transcendentals=hidden * total,     # one tanh per element per unit
        bytes_accessed=2 * total * itemsize,
    )

    smem_spec = pl.BlockSpec(memory_space=pltpu.MemorySpace.SMEM)

    out2d = pl.pallas_call(
        functools.partial(_jastrow_kernel, hidden=hidden),
        out_shape=jax.ShapeDtypeStruct((rows_p, lane_width), r.dtype),
        grid=grid,
        in_specs=[
            pl.BlockSpec((tb, lane_width), lambda i: (i, 0)),   # lane-dense r
            smem_spec,                                          # 0.5*w1 (H,)
            smem_spec,                                          # 0.5*b1 (H,)
            smem_spec,                                          # 0.5*w2 (H,)
            smem_spec,                                          # c0     (1,)
        ],
        out_specs=pl.BlockSpec((tb, lane_width), lambda i: (i, 0)),
        compiler_params=pltpu.CompilerParams(
            dimension_semantics=("parallel",),
        ),
        cost_estimate=cost,
    )(x2d, w1h, b1h, w2h, c0)

    # un-repack to the module's [Nbatch, Npair] output
    return out2d.reshape(-1)[:total].reshape(nbatch, npair)


# pure-JAX reference for a sanity check (matches the fc1 -> sigmoid -> fc2
# shape of the docstring example / FullyConnectedJastrowKernel)
def jastrow_forward_ref(r, w1, b1, w2, b2):
    nbatch, npair = r.shape
    x = r.reshape(-1, 1)
    h = jax.nn.sigmoid(x @ w1 + b1)
    y = h @ w2 + b2[0, 0]
    return y.reshape(nbatch, npair)


if __name__ == "__main__":
    # module config: nup=4, ndown=4  ->  Nelec = 8, Npair = 8*7/2 = 28
    nup, ndown = 4, 4
    nelec = nup + ndown
    npair = nelec * (nelec - 1) // 2
    nbatch = 16
    hidden = 16

    key = jax.random.PRNGKey(0)
    k_r, k_w1, k_b1, k_w2, k_b2 = jax.random.split(key, 5)

    # e-e distances are positive
    r = jax.random.uniform(k_r, (nbatch, npair), jnp.float32, 0.1, 3.0)

    # deterministic parameter init (fc1: 1->H, fc2: H->1)
    w1 = jax.random.normal(k_w1, (1, hidden), jnp.float32) * 0.5
    b1 = jax.random.normal(k_b1, (1, hidden), jnp.float32) * 0.1
    w2 = jax.random.normal(k_w2, (hidden, 1), jnp.float32) * 0.5
    b2 = jax.random.normal(k_b2, (1, 1), jnp.float32) * 0.1

    out = jastrow_forward(r, w1, b1, w2, b2)
    out = jax.block_until_ready(out)

    ref = jastrow_forward_ref(r, w1, b1, w2, b2)
    assert out.shape == (nbatch, npair)
    assert jnp.allclose(out, ref, atol=1e-5, rtol=1e-5)

    print("KERNEL_OK")
</pallas_src>

<mosaic_0001>
module attributes {stable_mosaic.version = 11 : i64} {
  func.func @_jastrow_kernel(%arg0: i32, %arg1: memref<8x512xf32, #tpu.memory_space<vmem>>, %arg2: memref<16xf32, #tpu.memory_space<smem>>, %arg3: memref<16xf32, #tpu.memory_space<smem>>, %arg4: memref<16xf32, #tpu.memory_space<smem>>, %arg5: memref<1xf32, #tpu.memory_space<smem>>, %arg6: memref<8x512xf32, #tpu.memory_space<vmem>>) attributes {dimension_semantics = [#tpu.dimension_semantics<parallel>], iteration_bounds = array<i64: 1>, scalar_prefetch = 0 : i64, scratch_operands = 0 : i64, tpu.core_type = #tpu.core_type<tc>, window_params = [{transform_indices = @transform_0, window_bounds = array<i64: 8, 512>}, {transform_indices = @transform_1, window_bounds = array<i64: 16>}, {transform_indices = @transform_2, window_bounds = array<i64: 16>}, {transform_indices = @transform_3, window_bounds = array<i64: 16>}, {transform_indices = @transform_4, window_bounds = array<i64: 1>}, {transform_indices = @transform_5, window_bounds = array<i64: 8, 512>}]} {
    %c0 = arith.constant 0 : index
    %c0_0 = arith.constant 0 : index
    %0 = vector.load %arg1[%c0, %c0_0] : memref<8x512xf32, #tpu.memory_space<vmem>>, vector<8x512xf32>
    %c0_1 = arith.constant 0 : index
    %1 = memref.load %arg5[%c0_1] : memref<1xf32, #tpu.memory_space<smem>>
    %2 = vector.broadcast %1 : f32 to vector<8x512xf32>
    %c0_2 = arith.constant 0 : index
    %3 = memref.load %arg4[%c0_2] : memref<16xf32, #tpu.memory_space<smem>>
    %c0_3 = arith.constant 0 : index
    %4 = memref.load %arg2[%c0_3] : memref<16xf32, #tpu.memory_space<smem>>
    %5 = vector.broadcast %4 : f32 to vector<8x512xf32>
    %6 = arith.mulf %0, %5 : vector<8x512xf32>
    %c0_4 = arith.constant 0 : index
    %7 = memref.load %arg3[%c0_4] : memref<16xf32, #tpu.memory_space<smem>>
    %8 = vector.broadcast %7 : f32 to vector<8x512xf32>
    %9 = arith.addf %6, %8 : vector<8x512xf32>
    %10 = math.tanh %9 : vector<8x512xf32>
    %11 = vector.broadcast %3 : f32 to vector<8x512xf32>
    %12 = arith.mulf %11, %10 : vector<8x512xf32>
    %13 = arith.addf %2, %12 : vector<8x512xf32>
    %c1 = arith.constant 1 : index
    %14 = memref.load %arg4[%c1] : memref<16xf32, #tpu.memory_space<smem>>
    %c1_5 = arith.constant 1 : index
    %15 = memref.load %arg2[%c1_5] : memref<16xf32, #tpu.memory_space<smem>>
    %16 = vector.broadcast %15 : f32 to vector<8x512xf32>
    %17 = arith.mulf %0, %16 : vector<8x512xf32>
    %c1_6 = arith.constant 1 : index
    %18 = memref.load %arg3[%c1_6] : memref<16xf32, #tpu.memory_space<smem>>
    %19 = vector.broadcast %18 : f32 to vector<8x512xf32>
    %20 = arith.addf %17, %19 : vector<8x512xf32>
    %21 = math.tanh %20 : vector<8x512xf32>
    %22 = vector.broadcast %14 : f32 to vector<8x512xf32>
    %23 = arith.mulf %22, %21 : vector<8x512xf32>
    %24 = arith.addf %13, %23 : vector<8x512xf32>
    %c2 = arith.constant 2 : index
    %25 = memref.load %arg4[%c2] : memref<16xf32, #tpu.memory_space<smem>>
    %c2_7 = arith.constant 2 : index
    %26 = memref.load %arg2[%c2_7] : memref<16xf32, #tpu.memory_space<smem>>
    %27 = vector.broadcast %26 : f32 to vector<8x512xf32>
    %28 = arith.mulf %0, %27 : vector<8x512xf32>
    %c2_8 = arith.constant 2 : index
    %29 = memref.load %arg3[%c2_8] : memref<16xf32, #tpu.memory_space<smem>>
    %30 = vector.broadcast %29 : f32 to vector<8x512xf32>
    %31 = arith.addf %28, %30 : vector<8x512xf32>
    %32 = math.tanh %31 : vector<8x512xf32>
    %33 = vector.broadcast %25 : f32 to vector<8x512xf32>
    %34 = arith.mulf %33, %32 : vector<8x512xf32>
    %35 = arith.addf %24, %34 : vector<8x512xf32>
    %c3 = arith.constant 3 : index
    %36 = memref.load %arg4[%c3] : memref<16xf32, #tpu.memory_space<smem>>
    %c3_9 = arith.constant 3 : index
    %37 = memref.load %arg2[%c3_9] : memref<16xf32, #tpu.memory_space<smem>>
    %38 = vector.broadcast %37 : f32 to vector<8x512xf32>
    %39 = arith.mulf %0, %38 : vector<8x512xf32>
    %c3_10 = arith.constant 3 : index
    %40 = memref.load %arg3[%c3_10] : memref<16xf32, #tpu.memory_space<smem>>
    %41 = vector.broadcast %40 : f32 to vector<8x512xf32>
    %42 = arith.addf %39, %41 : vector<8x512xf32>
    %43 = math.tanh %42 : vector<8x512xf32>
    %44 = vector.broadcast %36 : f32 to vector<8x512xf32>
    %45 = arith.mulf %44, %43 : vector<8x512xf32>
    %46 = arith.addf %35, %45 : vector<8x512xf32>
    %c4 = arith.constant 4 : index
    %47 = memref.load %arg4[%c4] : memref<16xf32, #tpu.memory_space<smem>>
    %c4_11 = arith.constant 4 : index
    %48 = memref.load %arg2[%c4_11] : memref<16xf32, #tpu.memory_space<smem>>
    %49 = vector.broadcast %48 : f32 to vector<8x512xf32>
    %50 = arith.mulf %0, %49 : vector<8x512xf32>
    %c4_12 = arith.constant 4 : index
    %51 = memref.load %arg3[%c4_12] : memref<16xf32, #tpu.memory_space<smem>>
    %52 = vector.broadcast %51 : f32 to vector<8x512xf32>
    %53 = arith.addf %50, %52 : vector<8x512xf32>
    %54 = math.tanh %53 : vector<8x512xf32>
    %55 = vector.broadcast %47 : f32 to vector<8x512xf32>
    %56 = arith.mulf %55, %54 : vector<8x512xf32>
    %57 = arith.addf %46, %56 : vector<8x512xf32>
    %c5 = arith.constant 5 : index
    %58 = memref.load %arg4[%c5] : memref<16xf32, #tpu.memory_space<smem>>
    %c5_13 = arith.constant 5 : index
    %59 = memref.load %arg2[%c5_13] : memref<16xf32, #tpu.memory_space<smem>>
    %60 = vector.broadcast %59 : f32 to vector<8x512xf32>
    %61 = arith.mulf %0, %60 : vector<8x512xf32>
    %c5_14 = arith.constant 5 : index
    %62 = memref.load %arg3[%c5_14] : memref<16xf32, #tpu.memory_space<smem>>
    %63 = vector.broadcast %62 : f32 to vector<8x512xf32>
    %64 = arith.addf %61, %63 : vector<8x512xf32>
    %65 = math.tanh %64 : vector<8x512xf32>
    %66 = vector.broadcast %58 : f32 to vector<8x512xf32>
    %67 = arith.mulf %66, %65 : vector<8x512xf32>
    %68 = arith.addf %57, %67 : vector<8x512xf32>
    %c6 = arith.constant 6 : index
    %69 = memref.load %arg4[%c6] : memref<16xf32, #tpu.memory_space<smem>>
    %c6_15 = arith.constant 6 : index
    %70 = memref.load %arg2[%c6_15] : memref<16xf32, #tpu.memory_space<smem>>
    %71 = vector.broadcast %70 : f32 to vector<8x512xf32>
    %72 = arith.mulf %0, %71 : vector<8x512xf32>
    %c6_16 = arith.constant 6 : index
    %73 = memref.load %arg3[%c6_16] : memref<16xf32, #tpu.memory_space<smem>>
    %74 = vector.broadcast %73 : f32 to vector<8x512xf32>
    %75 = arith.addf %72, %74 : vector<8x512xf32>
    %76 = math.tanh %75 : vector<8x512xf32>
    %77 = vector.broadcast %69 : f32 to vector<8x512xf32>
    %78 = arith.mulf %77, %76 : vector<8x512xf32>
    %79 = arith.addf %68, %78 : vector<8x512xf32>
    %c7 = arith.constant 7 : index
    %80 = memref.load %arg4[%c7] : memref<16xf32, #tpu.memory_space<smem>>
    %c7_17 = arith.constant 7 : index
    %81 = memref.load %arg2[%c7_17] : memref<16xf32, #tpu.memory_space<smem>>
    %82 = vector.broadcast %81 : f32 to vector<8x512xf32>
    %83 = arith.mulf %0, %82 : vector<8x512xf32>
    %c7_18 = arith.constant 7 : index
    %84 = memref.load %arg3[%c7_18] : memref<16xf32, #tpu.memory_space<smem>>
    %85 = vector.broadcast %84 : f32 to vector<8x512xf32>
    %86 = arith.addf %83, %85 : vector<8x512xf32>
    %87 = math.tanh %86 : vector<8x512xf32>
    %88 = vector.broadcast %80 : f32 to vector<8x512xf32>
    %89 = arith.mulf %88, %87 : vector<8x512xf32>
    %90 = arith.addf %79, %89 : vector<8x512xf32>
    %c8 = arith.constant 8 : index
    %91 = memref.load %arg4[%c8] : memref<16xf32, #tpu.memory_space<smem>>
    %c8_19 = arith.constant 8 : index
    %92 = memref.load %arg2[%c8_19] : memref<16xf32, #tpu.memory_space<smem>>
    %93 = vector.broadcast %92 : f32 to vector<8x512xf32>
    %94 = arith.mulf %0, %93 : vector<8x512xf32>
    %c8_20 = arith.constant 8 : index
    %95 = memref.load %arg3[%c8_20] : memref<16xf32, #tpu.memory_space<smem>>
    %96 = vector.broadcast %95 : f32 to vector<8x512xf32>
    %97 = arith.addf %94, %96 : vector<8x512xf32>
    %98 = math.tanh %97 : vector<8x512xf32>
    %99 = vector.broadcast %91 : f32 to vector<8x512xf32>
    %100 = arith.mulf %99, %98 : vector<8x512xf32>
    %101 = arith.addf %90, %100 : vector<8x512xf32>
    %c9 = arith.constant 9 : index
    %102 = memref.load %arg4[%c9] : memref<16xf32, #tpu.memory_space<smem>>
    %c9_21 = arith.constant 9 : index
    %103 = memref.load %arg2[%c9_21] : memref<16xf32, #tpu.memory_space<smem>>
    %104 = vector.broadcast %103 : f32 to vector<8x512xf32>
    %105 = arith.mulf %0, %104 : vector<8x512xf32>
    %c9_22 = arith.constant 9 : index
    %106 = memref.load %arg3[%c9_22] : memref<16xf32, #tpu.memory_space<smem>>
    %107 = vector.broadcast %106 : f32 to vector<8x512xf32>
    %108 = arith.addf %105, %107 : vector<8x512xf32>
    %109 = math.tanh %108 : vector<8x512xf32>
    %110 = vector.broadcast %102 : f32 to vector<8x512xf32>
    %111 = arith.mulf %110, %109 : vector<8x512xf32>
    %112 = arith.addf %101, %111 : vector<8x512xf32>
    %c10 = arith.constant 10 : index
    %113 = memref.load %arg4[%c10] : memref<16xf32, #tpu.memory_space<smem>>
    %c10_23 = arith.constant 10 : index
    %114 = memref.load %arg2[%c10_23] : memref<16xf32, #tpu.memory_space<smem>>
    %115 = vector.broadcast %114 : f32 to vector<8x512xf32>
    %116 = arith.mulf %0, %115 : vector<8x512xf32>
    %c10_24 = arith.constant 10 : index
    %117 = memref.load %arg3[%c10_24] : memref<16xf32, #tpu.memory_space<smem>>
    %118 = vector.broadcast %117 : f32 to vector<8x512xf32>
    %119 = arith.addf %116, %118 : vector<8x512xf32>
    %120 = math.tanh %119 : vector<8x512xf32>
    %121 = vector.broadcast %113 : f32 to vector<8x512xf32>
    %122 = arith.mulf %121, %120 : vector<8x512xf32>
    %123 = arith.addf %112, %122 : vector<8x512xf32>
    %c11 = arith.constant 11 : index
    %124 = memref.load %arg4[%c11] : memref<16xf32, #tpu.memory_space<smem>>
    %c11_25 = arith.constant 11 : index
    %125 = memref.load %arg2[%c11_25] : memref<16xf32, #tpu.memory_space<smem>>
    %126 = vector.broadcast %125 : f32 to vector<8x512xf32>
    %127 = arith.mulf %0, %126 : vector<8x512xf32>
    %c11_26 = arith.constant 11 : index
    %128 = memref.load %arg3[%c11_26] : memref<16xf32, #tpu.memory_space<smem>>
    %129 = vector.broadcast %128 : f32 to vector<8x512xf32>
    %130 = arith.addf %127, %129 : vector<8x512xf32>
    %131 = math.tanh %130 : vector<8x512xf32>
    %132 = vector.broadcast %124 : f32 to vector<8x512xf32>
    %133 = arith.mulf %132, %131 : vector<8x512xf32>
    %134 = arith.addf %123, %133 : vector<8x512xf32>
    %c12 = arith.constant 12 : index
    %135 = memref.load %arg4[%c12] : memref<16xf32, #tpu.memory_space<smem>>
    %c12_27 = arith.constant 12 : index
    %136 = memref.load %arg2[%c12_27] : memref<16xf32, #tpu.memory_space<smem>>
    %137 = vector.broadcast %136 : f32 to vector<8x512xf32>
    %138 = arith.mulf %0, %137 : vector<8x512xf32>
    %c12_28 = arith.constant 12 : index
    %139 = memref.load %arg3[%c12_28] : memref<16xf32, #tpu.memory_space<smem>>
    %140 = vector.broadcast %139 : f32 to vector<8x512xf32>
    %141 = arith.addf %138, %140 : vector<8x512xf32>
    %142 = math.tanh %141 : vector<8x512xf32>
    %143 = vector.broadcast %135 : f32 to vector<8x512xf32>
    %144 = arith.mulf %143, %142 : vector<8x512xf32>
    %145 = arith.addf %134, %144 : vector<8x512xf32>
    %c13 = arith.constant 13 : index
    %146 = memref.load %arg4[%c13] : memref<16xf32, #tpu.memory_space<smem>>
    %c13_29 = arith.constant 13 : index
    %147 = memref.load %arg2[%c13_29] : memref<16xf32, #tpu.memory_space<smem>>
    %148 = vector.broadcast %147 : f32 to vector<8x512xf32>
    %149 = arith.mulf %0, %148 : vector<8x512xf32>
    %c13_30 = arith.constant 13 : index
    %150 = memref.load %arg3[%c13_30] : memref<16xf32, #tpu.memory_space<smem>>
    %151 = vector.broadcast %150 : f32 to vector<8x512xf32>
    %152 = arith.addf %149, %151 : vector<8x512xf32>
    %153 = math.tanh %152 : vector<8x512xf32>
    %154 = vector.broadcast %146 : f32 to vector<8x512xf32>
    %155 = arith.mulf %154, %153 : vector<8x512xf32>
    %156 = arith.addf %145, %155 : vector<8x512xf32>
    %c14 = arith.constant 14 : index
    %157 = memref.load %arg4[%c14] : memref<16xf32, #tpu.memory_space<smem>>
    %c14_31 = arith.constant 14 : index
    %158 = memref.load %arg2[%c14_31] : memref<16xf32, #tpu.memory_space<smem>>
    %159 = vector.broadcast %158 : f32 to vector<8x512xf32>
    %160 = arith.mulf %0, %159 : vector<8x512xf32>
    %c14_32 = arith.constant 14 : index
    %161 = memref.load %arg3[%c14_32] : memref<16xf32, #tpu.memory_space<smem>>
    %162 = vector.broadcast %161 : f32 to vector<8x512xf32>
    %163 = arith.addf %160, %162 : vector<8x512xf32>
    %164 = math.tanh %163 : vector<8x512xf32>
    %165 = vector.broadcast %157 : f32 to vector<8x512xf32>
    %166 = arith.mulf %165, %164 : vector<8x512xf32>
    %167 = arith.addf %156, %166 : vector<8x512xf32>
    %c15 = arith.constant 15 : index
    %168 = memref.load %arg4[%c15] : memref<16xf32, #tpu.memory_space<smem>>
    %c15_33 = arith.constant 15 : index
    %169 = memref.load %arg2[%c15_33] : memref<16xf32, #tpu.memory_space<smem>>
    %170 = vector.broadcast %169 : f32 to vector<8x512xf32>
    %171 = arith.mulf %0, %170 : vector<8x512xf32>
    %c15_34 = arith.constant 15 : index
    %172 = memref.load %arg3[%c15_34] : memref<16xf32, #tpu.memory_space<smem>>
    %173 = vector.broadcast %172 : f32 to vector<8x512xf32>
    %174 = arith.addf %171, %173 : vector<8x512xf32>
    %175 = math.tanh %174 : vector<8x512xf32>
    %176 = vector.broadcast %168 : f32 to vector<8x512xf32>
    %177 = arith.mulf %176, %175 : vector<8x512xf32>
    %178 = arith.addf %167, %177 : vector<8x512xf32>
    %c0_35 = arith.constant 0 : index
    %c0_36 = arith.constant 0 : index
    %179 = vector.load %arg6[%c0_35, %c0_36] : memref<8x512xf32, #tpu.memory_space<vmem>>, vector<8x512xf32>
    tpu.vector_store %arg6[%c0_35, %c0_36], %178 {strides = array<i32>} : memref<8x512xf32, #tpu.memory_space<vmem>>, vector<8x512xf32>,
    return
  }
  func.func @transform_0(%arg0: i32) -> (i32, i32) {
    %c0_i32 = arith.constant 0 : i32
    %c0_i32_0 = arith.constant 0 : i32
    return %arg0, %c0_i32 : i32, i32
  }
  func.func @transform_1(%arg0: i32) -> i32 {
    %c0_i32 = arith.constant 0 : i32
    %c0_i32_0 = arith.constant 0 : i32
    return %c0_i32 : i32
  }
  func.func @transform_2(%arg0: i32) -> i32 {
    %c0_i32 = arith.constant 0 : i32
    %c0_i32_0 = arith.constant 0 : i32
    return %c0_i32 : i32
  }
  func.func @transform_3(%arg0: i32) -> i32 {
    %c0_i32 = arith.constant 0 : i32
    %c0_i32_0 = arith.constant 0 : i32
    return %c0_i32 : i32
  }
  func.func @transform_4(%arg0: i32) -> i32 {
    %c0_i32 = arith.constant 0 : i32
    %c0_i32_0 = arith.constant 0 : i32
    return %c0_i32 : i32
  }
  func.func @transform_5(%arg0: i32) -> (i32, i32) {
    %c0_i32 = arith.constant 0 : i32
    %c0_i32_0 = arith.constant 0 : i32
    return %arg0, %c0_i32 : i32, i32
  }
}

</mosaic_0001>

<bundles_post_ra>
// kernel: jastrow_forward.1
= control target key start
LH: loop header
LB: loop body
LE: loop exit
PB: predicated region body
PF: predicated region fallthrough
CT: control target
= control target key end

     0   :  { %11 = vsyncpa [#allocation4], 0  ;;  %s984_s0 = inlined_call_operand.vmem [shape: f32[8,512], index: 0, kind: input, shape index: {}]   ;;  %s985_s1 = inlined_call_operand.vmem [shape: f32[16], index: 1, kind: input, shape index: {}]   ;;  %s986_s2 = inlined_call_operand.vmem [shape: f32[16], index: 2, kind: input, shape index: {}]   ;;  %s987_s3 = inlined_call_operand.vmem [shape: f32[16], index: 3, kind: input, shape index: {}]   ;;  %s988_s4 = inlined_call_operand.<no memory space> [shape: f32[1], index: 4, kind: input, shape index: {}]   ;;  %s989_s5 = inlined_call_operand.vmem [shape: f32[8,512], index: 5, kind: output, shape index: {}]  }
   0x1   :  { %12 = vsyncpa [#allocation6], 0  ;;  %s29_s20 = sshll.u32 %s986_s2, 4  ;;  %s20_s23 = sshll.u32 %s985_s1, 4  ;;  %s30_s20 = int_to_ptr.vmem [resolvable:$true] %s29_s20  ;;  %s21_s23 = int_to_ptr.vmem [resolvable:$true] %s20_s23 }
   0x2   :  { %s705_s24 = smov [#allocation5]   ;;  %s706_s25 = smov [#allocation3]  }
   0x3   :  { %32 = dma.vmem_to_smem %s30_s20, 16, %s705_s24, [#allocation6]  }
   0x4   :  { %23 = dma.vmem_to_smem %s21_s23, 16, %s706_s25, [#allocation4]  }
   0x5   :  { %s38_s28 = sshll.u32 %s987_s3, 4  ;;  %s707_s29 = smov [#allocation7]   ;;  %s39_s28 = int_to_ptr.vmem [resolvable:$true] %s38_s28 }
   0x6   :  { %41 = dma.vmem_to_smem %s39_s28, 16, %s707_s29, [#allocation6]  }
   0x7   :  { %701 = dma.done.wait [#allocation4], 16  }
   0x8   :  { %702 = vsyncadd [#allocation4], 4294967280 }
   0x9   :  { %703 = dma.done.wait [#allocation6], 32  }
   0xa   :  { %704 = vsyncadd [#allocation6], 4294967264 }
   0xb   :  { %56 = sfence }
   0xc   :  { %s63_s2 = sld [smem:[#allocation7]]  ;;  %v752_v0 = vld [vmem:[%s984_s0] sm:$0xff]  ;;  %v757_v1 = vld [vmem:[%s984_s0 + $0x8] sm:$0xff]  ;;  %v762_v2 = vld [vmem:[%s984_s0 + $0x10] sm:$0xff]  ;;  %v778_v10 = vstv %s988_s4 }
   0xd   :  { %s64_s30 = sld [smem:[#allocation3]]  ;;  %v767_v3 = vld [vmem:[%s984_s0 + $0x18] sm:$0xff] }
   0xe   :  { %s70_s1 = sld [smem:[#allocation5]] }
   0xf   :  { %s747_s6 = sld [smem:[#allocation7 + $0x1]] }
  0x10   :  { %s490_s9 = sld [smem:[#allocation3 + $0x1]] }
  0x11   :  { %s491_s15 = sld [smem:[#allocation5 + $0x1]] }
  0x12   :  { %s493_s16 = sld [smem:[#allocation3 + $0x2]]  ;;  %v80_v15 = vstv %s63_s2 }
  0x13   :  { %v65_v4 = vstv %s64_s30  ;;  %s773_s17 = sld [smem:[#allocation5 + $0x2]] }
  0x14   :  { %v66_v5 = vmul.f32 %v65_v4, %v752_v0  ;;  %v67_v6 = vmul.f32 %v65_v4, %v757_v1  ;;  %v68_v7 = vmul.f32 %v65_v4, %v762_v2  ;;  %v69_v8 = vmul.f32 %v65_v4, %v767_v3  ;;  %s780_s0 = sld [smem:[#allocation3 + $0x3]] }
  0x15   :  { %v71_v9 = vstv %s70_s1  ;;  %s785_s20 = sld [smem:[#allocation5 + $0x3]]  ;;  %v789_v22 = vstv %s747_s6 }
  0x16   :  { %v72_v11 = vadd.f32 %v71_v9, %v66_v5  ;;  %v73_v12 = vadd.f32 %v71_v9, %v67_v6  ;;  %v74_v13 = vadd.f32 %v71_v9, %v68_v7  ;;  %v75_v14 = vadd.f32 %v71_v9, %v69_v8  ;;  %s791_s4 = sld [smem:[#allocation7 + $0x2]] }
  0x17   :  { %v91_v16 = vstv %s490_s9  ;;  %v97_v17 = vstv %s491_s15  ;;  %s798_s21 = sld [smem:[#allocation7 + $0x3]] }
  0x18   :  { %537 = vtanh.f32 %v72_v11  ;;  %v92_v18 = vmul.f32 %v91_v16, %v752_v0  ;;  %v93_v19 = vmul.f32 %v91_v16, %v757_v1  ;;  %v94_v20 = vmul.f32 %v91_v16, %v762_v2  ;;  %s802_s22 = sld [smem:[#allocation3 + $0x4]] }
  0x19   :  { %539 = vtanh.f32 %v73_v12  ;;  %v95_v21 = vmul.f32 %v91_v16, %v767_v3  ;;  %v117_v23 = vstv %s493_s16  ;;  %v123_v32 = vstv %s773_s17  ;;  %s809_s23 = sld [smem:[#allocation5 + $0x4]] }
  0x1a   :  { %541 = vtanh.f32 %v74_v13  ;;  %v98_v24 = vadd.f32 %v97_v17, %v92_v18  ;;  %v99_v25 = vadd.f32 %v97_v17, %v93_v19  ;;  %v100_v26 = vadd.f32 %v97_v17, %v94_v20  ;;  %s818_s24 = sld [smem:[#allocation3 + $0x5]] }
  0x1b   :  { %543 = vtanh.f32 %v75_v14  ;;  %v101_v27 = vadd.f32 %v97_v17, %v95_v21  ;;  %v118_v28 = vmul.f32 %v117_v23, %v752_v0  ;;  %v119_v29 = vmul.f32 %v117_v23, %v757_v1  ;;  %s822_s25 = sld [smem:[#allocation7 + $0x4]] }
  0x1c   :  { %545 = vtanh.f32 %v98_v24  ;;  %v120_v30 = vmul.f32 %v117_v23, %v762_v2  ;;  %v121_v31 = vmul.f32 %v117_v23, %v767_v3  ;;  %v143_v35 = vstv %s780_s0  ;;  %s828_s26 = sld [smem:[#allocation5 + $0x5]] }
  0x1d   :  { %547 = vtanh.f32 %v99_v25  ;;  %v124_v33 = vadd.f32 %v123_v32, %v118_v28  ;;  %v125_v34 = vadd.f32 %v123_v32, %v119_v29  ;;  %v144_v39 = vmul.f32 %v143_v35, %v752_v0  ;;  %s832_s27 = sld [smem:[#allocation3 + $0x6]] }
  0x1e   :  { %v538_v36 = vpop.eup %537  ;;  %549 = vtanh.f32 %v100_v26  ;;  %v126_v37 = vadd.f32 %v123_v32, %v120_v30  ;;  %v127_v38 = vadd.f32 %v123_v32, %v121_v31  ;;  %v145_v42 = vmul.f32 %v143_v35, %v757_v1  ;;  %s834_s28 = sld [smem:[#allocation5 + $0x6]] }
  0x1f   :  { %v540_v40 = vpop.eup %539  ;;  %v81_v41 = vmul.f32 %v538_v36, %v80_v15  ;;  %551 = vtanh.f32 %v101_v27  ;;  %v146_v43 = vmul.f32 %v143_v35, %v762_v2  ;;  %v147_v46 = vmul.f32 %v143_v35, %v767_v3  ;;  %s838_s29 = sld [smem:[#allocation7 + $0x5]] }
  0x20   :  { %v542_v44 = vpop.eup %541  ;;  %v82_v45 = vmul.f32 %v540_v40, %v80_v15  ;;  %553 = vtanh.f32 %v124_v33  ;;  %v149_v47 = vstv %s785_s20  ;;  %v132_v54 = vstv %s791_s4  ;;  %s843_s2 = sld [smem:[#allocation3 + $0x7]] }
  0x21   :  { %v544_v48 = vpop.eup %543  ;;  %v83_v49 = vmul.f32 %v542_v44, %v80_v15  ;;  %v85_v50 = vadd.f32 %v81_v41, %v778_v10  ;;  %555 = vtanh.f32 %v125_v34  ;;  %v150_v51 = vadd.f32 %v149_v47, %v144_v39  ;;  %s848_s30 = sld [smem:[#allocation5 + $0x7]] }
  0x22   :  { %v546_v52 = vpop.eup %545  ;;  %v84_v53 = vmul.f32 %v544_v48, %v80_v15  ;;  %557 = vtanh.f32 %v126_v37  ;;  %v151_v55 = vadd.f32 %v149_v47, %v145_v42  ;;  %v86_v57 = vadd.f32 %v82_v45, %v778_v10  ;;  %s853_s1 = sld [smem:[#allocation7 + $0x6]] }
  0x23   :  { %v548_v56 = vpop.eup %547  ;;  %v107_v58 = vmul.f32 %v546_v52, %v789_v22  ;;  %559 = vtanh.f32 %v127_v38  ;;  %v152_v59 = vadd.f32 %v149_v47, %v146_v43  ;;  %v87_v61 = vadd.f32 %v83_v49, %v778_v10  ;;  %s857_s6 = sld [smem:[#allocation3 + $0x8]] }
  0x24   :  { %v550_v60 = vpop.eup %549  ;;  %v108_v62 = vmul.f32 %v548_v56, %v789_v22  ;;  %v153_v63 = vadd.f32 %v149_v47, %v147_v46  ;;  %561 = vtanh.f32 %v150_v51  ;;  %v88_v5 = vadd.f32 %v84_v53, %v778_v10  ;;  %s860_s7 = sld [smem:[#allocation7 + $0x7]] }
  0x25   :  { %v552_v4 = vpop.eup %551  ;;  %v109_v6 = vmul.f32 %v550_v60, %v789_v22  ;;  %v111_v7 = vadd.f32 %v107_v58, %v85_v50  ;;  %563 = vtanh.f32 %v151_v55  ;;  %v158_v11 = vstv %s798_s21  ;;  %s865_s8 = sld [smem:[#allocation5 + $0x8]] }
  0x26   :  { %v554_v8 = vpop.eup %553  ;;  %v110_v9 = vmul.f32 %v552_v4, %v789_v22  ;;  %565 = vtanh.f32 %v152_v59  ;;  %v169_v12 = vstv %s802_s22  ;;  %v112_v14 = vadd.f32 %v108_v62, %v86_v57  ;;  %s871_s9 = sld [smem:[#allocation3 + $0x9]] }
  0x27   :  { %v556_v13 = vpop.eup %555  ;;  %v133_v15 = vmul.f32 %v554_v8, %v132_v54  ;;  %567 = vtanh.f32 %v153_v63  ;;  %v170_v10 = vmul.f32 %v169_v12, %v752_v0  ;;  %v113_v17 = vadd.f32 %v109_v6, %v87_v61  ;;  %s874_s3 = sld [smem:[#allocation7 + $0x8]] }
  0x28   :  { %v558_v16 = vpop.eup %557  ;;  %v134_v18 = vmul.f32 %v556_v13, %v132_v54  ;;  %v171_v19 = vmul.f32 %v169_v12, %v757_v1  ;;  %v172_v20 = vmul.f32 %v169_v12, %v762_v2  ;;  %v114_v22 = vadd.f32 %v110_v9, %v88_v5  ;;  %s878_s10 = sld [smem:[#allocation5 + $0x9]] }
  0x29   :  { %v560_v21 = vpop.eup %559  ;;  %v135_v23 = vmul.f32 %v558_v16, %v132_v54  ;;  %v173_v24 = vmul.f32 %v169_v12, %v767_v3  ;;  %v175_v25 = vstv %s809_s23  ;;  %v137_v28 = vadd.f32 %v133_v15, %v111_v7  ;;  %s881_s11 = sld [smem:[#allocation3 + $0xa]] }
  0x2a   :  { %v562_v26 = vpop.eup %561  ;;  %v136_v27 = vmul.f32 %v560_v21, %v132_v54  ;;  %v176_v29 = vadd.f32 %v175_v25, %v170_v10  ;;  %v177_v30 = vadd.f32 %v175_v25, %v171_v19  ;;  %v178_v33 = vadd.f32 %v175_v25, %v172_v20  ;;  %s886_s12 = sld [smem:[#allocation5 + $0xa]] }
  0x2b   :  { %v564_v31 = vpop.eup %563  ;;  %v159_v32 = vmul.f32 %v562_v26, %v158_v11  ;;  %v179_v34 = vadd.f32 %v175_v25, %v173_v24  ;;  %v138_v36 = vadd.f32 %v134_v18, %v112_v14  ;;  %v139_v37 = vadd.f32 %v135_v23, %v113_v17  ;;  %s889_s13 = sld [smem:[#allocation7 + $0x9]] }
  0x2c   :  { %v566_v35 = vpop.eup %565  ;;  %v160_v38 = vmul.f32 %v564_v31, %v158_v11  ;;  %569 = vtanh.f32 %v176_v29  ;;  %v140_v40 = vadd.f32 %v136_v27, %v114_v22  ;;  %v195_v42 = vstv %s818_s24  ;;  %s896_s14 = sld [smem:[#allocation3 + $0xb]] }
  0x2d   :  { %v568_v39 = vpop.eup %567  ;;  %v161_v41 = vmul.f32 %v566_v35, %v158_v11  ;;  %571 = vtanh.f32 %v177_v30  ;;  %v163_v43 = vadd.f32 %v159_v32, %v137_v28  ;;  %v184_v44 = vstv %s822_s25  ;;  %s900_s15 = sld [smem:[#allocation5 + $0xb]] }
  0x2e   :  { %573 = vtanh.f32 %v178_v33  ;;  %v196_v45 = vmul.f32 %v195_v42, %v752_v0  ;;  %v162_v46 = vmul.f32 %v568_v39, %v158_v11  ;;  %v197_v47 = vmul.f32 %v195_v42, %v757_v1  ;;  %s905_s16 = sld [smem:[#allocation7 + $0xa]] }
  0x2f   :  { %575 = vtanh.f32 %v179_v34  ;;  %v198_v48 = vmul.f32 %v195_v42, %v762_v2  ;;  %v164_v49 = vadd.f32 %v160_v38, %v138_v36  ;;  %v165_v50 = vadd.f32 %v161_v41, %v139_v37  ;;  %s909_s17 = sld [smem:[#allocation3 + $0xc]] }
  0x30   :  { %v199_v51 = vmul.f32 %v195_v42, %v767_v3  ;;  %v201_v52 = vstv %s828_s26  ;;  %v221_v56 = vstv %s832_s27  ;;  %v227_v5 = vstv %s834_s28  ;;  %s912_s18 = sld [smem:[#allocation7 + $0xb]] }
  0x31   :  { %v202_v53 = vadd.f32 %v201_v52, %v196_v45  ;;  %v203_v54 = vadd.f32 %v201_v52, %v197_v47  ;;  %v204_v55 = vadd.f32 %v201_v52, %v198_v48  ;;  %v222_v59 = vmul.f32 %v221_v56, %v752_v0  ;;  %s917_s19 = sld [smem:[#allocation5 + $0xc]] }
  0x32   :  { %v570_v57 = vpop.eup %569  ;;  %v205_v58 = vadd.f32 %v201_v52, %v199_v51  ;;  %v223_v60 = vmul.f32 %v221_v56, %v757_v1  ;;  %v224_v61 = vmul.f32 %v221_v56, %v762_v2  ;;  %v225_v4 = vmul.f32 %v221_v56, %v767_v3  ;;  %s923_s0 = sld [smem:[#allocation3 + $0xd]] }
  0x33   :  { %v572_v62 = vpop.eup %571  ;;  %v185_v63 = vmul.f32 %v570_v57, %v184_v44  ;;  %577 = vtanh.f32 %v202_v53  ;;  %v228_v8 = vadd.f32 %v227_v5, %v222_v59  ;;  %v166_v12 = vadd.f32 %v162_v46, %v140_v40  ;;  %s926_s20 = sld [smem:[#allocation7 + $0xc]] }
  0x34   :  { %v574_v6 = vpop.eup %573  ;;  %v186_v7 = vmul.f32 %v572_v62, %v184_v44  ;;  %579 = vtanh.f32 %v203_v54  ;;  %v229_v9 = vadd.f32 %v227_v5, %v223_v60  ;;  %v230_v14 = vadd.f32 %v227_v5, %v224_v61  ;;  %s930_s4 = sld [smem:[#allocation5 + $0xd]] }
  0x35   :  { %v576_v11 = vpop.eup %575  ;;  %v187_v13 = vmul.f32 %v574_v6, %v184_v44  ;;  %581 = vtanh.f32 %v204_v55  ;;  %v189_v15 = vadd.f32 %v185_v63, %v163_v43  ;;  %v210_v10 = vstv %s838_s29  ;;  %s933_s21 = sld [smem:[#allocation3 + $0xe]] }
  0x36   :  { %583 = vtanh.f32 %v205_v58  ;;  %v231_v16 = vadd.f32 %v227_v5, %v225_v4  ;;  %v188_v17 = vmul.f32 %v576_v11, %v184_v44  ;;  %v190_v18 = vadd.f32 %v186_v7, %v164_v49  ;;  %s938_s22 = sld [smem:[#allocation5 + $0xe]] }
  0x37   :  { %585 = vtanh.f32 %v228_v8  ;;  %v247_v19 = vstv %s843_s2  ;;  %v191_v20 = vadd.f32 %v187_v13, %v165_v50  ;;  %v253_v26 = vstv %s848_s30  ;;  %s941_s23 = sld [smem:[#allocation7 + $0xd]] }
  0x38   :  { %587 = vtanh.f32 %v229_v9  ;;  %v248_v21 = vmul.f32 %v247_v19, %v752_v0  ;;  %v249_v22 = vmul.f32 %v247_v19, %v757_v1  ;;  %v250_v24 = vmul.f32 %v247_v19, %v762_v2  ;;  %s948_s24 = sld [smem:[#allocation3 + $0xf]] }
  0x39   :  { %v578_v23 = vpop.eup %577  ;;  %589 = vtanh.f32 %v230_v14  ;;  %v251_v25 = vmul.f32 %v247_v19, %v767_v3  ;;  %v236_v33 = vstv %s853_s1  ;;  %v192_v37 = vadd.f32 %v188_v17, %v166_v12  ;;  %s952_s25 = sld [smem:[#allocation5 + $0xf]] }
  0x3a   :  { %v580_v27 = vpop.eup %579  ;;  %v211_v28 = vmul.f32 %v578_v23, %v210_v10  ;;  %591 = vtanh.f32 %v231_v16  ;;  %v254_v29 = vadd.f32 %v253_v26, %v248_v21  ;;  %v255_v30 = vadd.f32 %v253_v26, %v249_v22  ;;  %s957_s26 = sld [smem:[#allocation7 + $0xe]] }
  0x3b   :  { %v582_v31 = vpop.eup %581  ;;  %v212_v32 = vmul.f32 %v580_v27, %v210_v10  ;;  %v256_v34 = vadd.f32 %v253_v26, %v250_v24  ;;  %v257_v35 = vadd.f32 %v253_v26, %v251_v25  ;;  %v273_v39 = vstv %s857_s6  ;;  %s963_s27 = sld [smem:[#allocation7 + $0xf]] }
  0x3c   :  { %v584_v36 = vpop.eup %583  ;;  %v213_v38 = vmul.f32 %v582_v31, %v210_v10  ;;  %593 = vtanh.f32 %v254_v29  ;;  %v215_v42 = vadd.f32 %v211_v28, %v189_v15  ;;  %v274_v43 = vmul.f32 %v273_v39, %v752_v0 }
  0x3d   :  { %v586_v40 = vpop.eup %585  ;;  %v214_v41 = vmul.f32 %v584_v36, %v210_v10  ;;  %595 = vtanh.f32 %v255_v30  ;;  %v216_v45 = vadd.f32 %v212_v32, %v190_v18  ;;  %v275_v47 = vmul.f32 %v273_v39, %v757_v1 }
  0x3e   :  { %v588_v44 = vpop.eup %587  ;;  %v237_v46 = vmul.f32 %v586_v40, %v236_v33  ;;  %597 = vtanh.f32 %v256_v34  ;;  %v217_v49 = vadd.f32 %v213_v38, %v191_v20  ;;  %v276_v51 = vmul.f32 %v273_v39, %v762_v2 }
  0x3f   :  { %v590_v48 = vpop.eup %589  ;;  %v238_v50 = vmul.f32 %v588_v44, %v236_v33  ;;  %599 = vtanh.f32 %v257_v35  ;;  %v262_v54 = vstv %s860_s7  ;;  %v277_v55 = vmul.f32 %v273_v39, %v767_v3 }
  0x40   :  { %v592_v52 = vpop.eup %591  ;;  %v239_v53 = vmul.f32 %v590_v48, %v236_v33  ;;  %v279_v56 = vstv %s865_s8  ;;  %v218_v57 = vadd.f32 %v214_v41, %v192_v37  ;;  %v241_v58 = vadd.f32 %v237_v46, %v215_v42 }
  0x41   :  { %v280_v59 = vadd.f32 %v279_v56, %v274_v43  ;;  %v281_v60 = vadd.f32 %v279_v56, %v275_v47  ;;  %v240_v62 = vmul.f32 %v592_v52, %v236_v33  ;;  %v242_v63 = vadd.f32 %v238_v50, %v216_v45 }
  0x42   :  { %v594_v61 = vpop.eup %593  ;;  %v282_v4 = vadd.f32 %v279_v56, %v276_v51  ;;  %v283_v5 = vadd.f32 %v279_v56, %v277_v55  ;;  %v243_v7 = vadd.f32 %v239_v53, %v217_v49  ;;  %v299_v9 = vstv %s871_s9 }
  0x43   :  { %v596_v6 = vpop.eup %595  ;;  %v263_v8 = vmul.f32 %v594_v61, %v262_v54  ;;  %601 = vtanh.f32 %v280_v59  ;;  %v300_v13 = vmul.f32 %v299_v9, %v752_v0  ;;  %v301_v14 = vmul.f32 %v299_v9, %v757_v1 }
  0x44   :  { %v598_v11 = vpop.eup %597  ;;  %v264_v12 = vmul.f32 %v596_v6, %v262_v54  ;;  %603 = vtanh.f32 %v281_v60  ;;  %v288_v16 = vstv %s874_s3  ;;  %v302_v17 = vmul.f32 %v299_v9, %v762_v2 }
  0x45   :  { %v600_v15 = vpop.eup %599  ;;  %v265_v10 = vmul.f32 %v598_v11, %v262_v54  ;;  %605 = vtanh.f32 %v282_v4  ;;  %v244_v18 = vadd.f32 %v240_v62, %v218_v57  ;;  %v267_v19 = vadd.f32 %v263_v8, %v241_v58 }
  0x46   :  { %607 = vtanh.f32 %v283_v5  ;;  %v303_v20 = vmul.f32 %v299_v9, %v767_v3  ;;  %v266_v21 = vmul.f32 %v600_v15, %v262_v54  ;;  %v268_v22 = vadd.f32 %v264_v12, %v242_v63 }
  0x47   :  { %v305_v23 = vstv %s878_s10  ;;  %v325_v24 = vstv %s881_s11  ;;  %v269_v25 = vadd.f32 %v265_v10, %v243_v7  ;;  %v331_v37 = vstv %s886_s12 }
  0x48   :  { %v306_v26 = vadd.f32 %v305_v23, %v300_v13  ;;  %v307_v27 = vadd.f32 %v305_v23, %v301_v14  ;;  %v308_v28 = vadd.f32 %v305_v23, %v302_v17  ;;  %v309_v30 = vadd.f32 %v305_v23, %v303_v20 }
  0x49   :  { %v602_v29 = vpop.eup %601  ;;  %v326_v31 = vmul.f32 %v325_v24, %v752_v0  ;;  %v327_v32 = vmul.f32 %v325_v24, %v757_v1  ;;  %v328_v33 = vmul.f32 %v325_v24, %v762_v2  ;;  %v329_v36 = vmul.f32 %v325_v24, %v767_v3 }
  0x4a   :  { %v604_v34 = vpop.eup %603  ;;  %v289_v35 = vmul.f32 %v602_v29, %v288_v16  ;;  %609 = vtanh.f32 %v306_v26  ;;  %v314_v44 = vstv %s889_s13  ;;  %v270_v46 = vadd.f32 %v266_v21, %v244_v18 }
  0x4b   :  { %v606_v38 = vpop.eup %605  ;;  %v290_v39 = vmul.f32 %v604_v34, %v288_v16  ;;  %611 = vtanh.f32 %v307_v27  ;;  %v332_v40 = vadd.f32 %v331_v37, %v326_v31  ;;  %v333_v41 = vadd.f32 %v331_v37, %v327_v32 }
  0x4c   :  { %v608_v42 = vpop.eup %607  ;;  %v291_v43 = vmul.f32 %v606_v38, %v288_v16  ;;  %613 = vtanh.f32 %v308_v28  ;;  %v334_v45 = vadd.f32 %v331_v37, %v328_v33  ;;  %v293_v47 = vadd.f32 %v289_v35, %v267_v19 }
  0x4d   :  { %615 = vtanh.f32 %v309_v30  ;;  %v335_v48 = vadd.f32 %v331_v37, %v329_v36  ;;  %v292_v49 = vmul.f32 %v608_v42, %v288_v16  ;;  %v294_v50 = vadd.f32 %v290_v39, %v268_v22 }
  0x4e   :  { %617 = vtanh.f32 %v332_v40  ;;  %v351_v51 = vstv %s896_s14  ;;  %v295_v52 = vadd.f32 %v291_v43, %v269_v25  ;;  %v357_v58 = vstv %s900_s15 }
  0x4f   :  { %619 = vtanh.f32 %v333_v41  ;;  %v352_v53 = vmul.f32 %v351_v51, %v752_v0  ;;  %v353_v54 = vmul.f32 %v351_v51, %v757_v1  ;;  %v354_v56 = vmul.f32 %v351_v51, %v762_v2 }
  0x50   :  { %v610_v55 = vpop.eup %609  ;;  %621 = vtanh.f32 %v334_v45  ;;  %v355_v57 = vmul.f32 %v351_v51, %v767_v3  ;;  %v340_v5 = vstv %s905_s16  ;;  %v296_v9 = vadd.f32 %v292_v49, %v270_v46 }
  0x51   :  { %v612_v59 = vpop.eup %611  ;;  %v315_v60 = vmul.f32 %v610_v55, %v314_v44  ;;  %623 = vtanh.f32 %v335_v48  ;;  %v358_v61 = vadd.f32 %v357_v58, %v352_v53  ;;  %v359_v62 = vadd.f32 %v357_v58, %v353_v54 }
  0x52   :  { %v614_v63 = vpop.eup %613  ;;  %v316_v4 = vmul.f32 %v612_v59, %v314_v44  ;;  %v360_v6 = vadd.f32 %v357_v58, %v354_v56  ;;  %v361_v7 = vadd.f32 %v357_v58, %v355_v57  ;;  %v377_v12 = vstv %s909_s17 }
  0x53   :  { %v616_v8 = vpop.eup %615  ;;  %v317_v11 = vmul.f32 %v614_v63, %v314_v44  ;;  %625 = vtanh.f32 %v358_v61  ;;  %v319_v15 = vadd.f32 %v315_v60, %v293_v47  ;;  %v378_v10 = vmul.f32 %v377_v12, %v752_v0 }
  0x54   :  { %v618_v13 = vpop.eup %617  ;;  %v318_v14 = vmul.f32 %v616_v8, %v314_v44  ;;  %627 = vtanh.f32 %v359_v62  ;;  %v320_v17 = vadd.f32 %v316_v4, %v294_v50  ;;  %v379_v19 = vmul.f32 %v377_v12, %v757_v1 }
  0x55   :  { %v620_v16 = vpop.eup %619  ;;  %v341_v18 = vmul.f32 %v618_v13, %v340_v5  ;;  %629 = vtanh.f32 %v360_v6  ;;  %v321_v21 = vadd.f32 %v317_v11, %v295_v52  ;;  %v380_v23 = vmul.f32 %v377_v12, %v762_v2 }
  0x56   :  { %v622_v20 = vpop.eup %621  ;;  %v342_v22 = vmul.f32 %v620_v16, %v340_v5  ;;  %631 = vtanh.f32 %v361_v7  ;;  %v366_v26 = vstv %s912_s18  ;;  %v381_v27 = vmul.f32 %v377_v12, %v767_v3 }
  0x57   :  { %v624_v24 = vpop.eup %623  ;;  %v343_v25 = vmul.f32 %v622_v20, %v340_v5  ;;  %v383_v28 = vstv %s917_s19  ;;  %v322_v29 = vadd.f32 %v318_v14, %v296_v9  ;;  %v345_v30 = vadd.f32 %v341_v18, %v319_v15 }
  0x58   :  { %v384_v31 = vadd.f32 %v383_v28, %v378_v10  ;;  %v385_v32 = vadd.f32 %v383_v28, %v379_v19  ;;  %v344_v34 = vmul.f32 %v624_v24, %v340_v5  ;;  %v346_v35 = vadd.f32 %v342_v22, %v320_v17 }
  0x59   :  { %v626_v33 = vpop.eup %625  ;;  %v386_v36 = vadd.f32 %v383_v28, %v380_v23  ;;  %v387_v37 = vadd.f32 %v383_v28, %v381_v27  ;;  %v347_v39 = vadd.f32 %v343_v25, %v321_v21  ;;  %v403_v41 = vstv %s923_s0 }
  0x5a   :  { %v628_v38 = vpop.eup %627  ;;  %v367_v40 = vmul.f32 %v626_v33, %v366_v26  ;;  %633 = vtanh.f32 %v384_v31  ;;  %v404_v44 = vmul.f32 %v403_v41, %v752_v0  ;;  %v405_v45 = vmul.f32 %v403_v41, %v757_v1 }
  0x5b   :  { %v630_v42 = vpop.eup %629  ;;  %v368_v43 = vmul.f32 %v628_v38, %v366_v26  ;;  %635 = vtanh.f32 %v385_v32  ;;  %v392_v48 = vstv %s926_s20  ;;  %v406_v49 = vmul.f32 %v403_v41, %v762_v2 }
  0x5c   :  { %v632_v46 = vpop.eup %631  ;;  %v369_v47 = vmul.f32 %v630_v42, %v366_v26  ;;  %637 = vtanh.f32 %v386_v36  ;;  %v348_v50 = vadd.f32 %v344_v34, %v322_v29  ;;  %v371_v51 = vadd.f32 %v367_v40, %v345_v30 }
  0x5d   :  { %639 = vtanh.f32 %v387_v37  ;;  %v407_v52 = vmul.f32 %v403_v41, %v767_v3  ;;  %v370_v53 = vmul.f32 %v632_v46, %v366_v26  ;;  %v372_v54 = vadd.f32 %v368_v43, %v346_v35 }
  0x5e   :  { %v409_v55 = vstv %s930_s4  ;;  %v429_v56 = vstv %s933_s21  ;;  %v373_v57 = vadd.f32 %v369_v47, %v347_v39  ;;  %v435_v9 = vstv %s938_s22 }
  0x5f   :  { %v410_v58 = vadd.f32 %v409_v55, %v404_v44  ;;  %v411_v59 = vadd.f32 %v409_v55, %v405_v45  ;;  %v412_v60 = vadd.f32 %v409_v55, %v406_v49  ;;  %v413_v62 = vadd.f32 %v409_v55, %v407_v52 }
  0x60   :  { %v634_v61 = vpop.eup %633  ;;  %v430_v63 = vmul.f32 %v429_v56, %v752_v0  ;;  %v431_v4 = vmul.f32 %v429_v56, %v757_v1  ;;  %v432_v5 = vmul.f32 %v429_v56, %v762_v2  ;;  %v433_v8 = vmul.f32 %v429_v56, %v767_v3 }
  0x61   :  { %v636_v6 = vpop.eup %635  ;;  %v393_v7 = vmul.f32 %v634_v61, %v392_v48  ;;  %641 = vtanh.f32 %v410_v58  ;;  %v418_v16 = vstv %s941_s23  ;;  %v374_v18 = vadd.f32 %v370_v53, %v348_v50 }
  0x62   :  { %v638_v11 = vpop.eup %637  ;;  %v394_v12 = vmul.f32 %v636_v6, %v392_v48  ;;  %643 = vtanh.f32 %v411_v59  ;;  %v436_v13 = vadd.f32 %v435_v9, %v430_v63  ;;  %v437_v14 = vadd.f32 %v435_v9, %v431_v4 }
  0x63   :  { %v640_v15 = vpop.eup %639  ;;  %v395_v10 = vmul.f32 %v638_v11, %v392_v48  ;;  %645 = vtanh.f32 %v412_v60  ;;  %v438_v17 = vadd.f32 %v435_v9, %v432_v5  ;;  %v397_v19 = vadd.f32 %v393_v7, %v371_v51 }
  0x64   :  { %647 = vtanh.f32 %v413_v62  ;;  %v439_v20 = vadd.f32 %v435_v9, %v433_v8  ;;  %v396_v21 = vmul.f32 %v640_v15, %v392_v48  ;;  %v398_v22 = vadd.f32 %v394_v12, %v372_v54 }
  0x65   :  { %649 = vtanh.f32 %v436_v13  ;;  %v455_v23 = vstv %s948_s24  ;;  %v399_v24 = vadd.f32 %v395_v10, %v373_v57  ;;  %v461_v30 = vstv %s952_s25 }
  0x66   :  { %651 = vtanh.f32 %v437_v14  ;;  %v456_v25 = vmul.f32 %v455_v23, %v752_v0  ;;  %v457_v26 = vmul.f32 %v455_v23, %v757_v1  ;;  %v458_v28 = vmul.f32 %v455_v23, %v762_v2 }
  0x67   :  { %v642_v27 = vpop.eup %641  ;;  %653 = vtanh.f32 %v438_v17  ;;  %v459_v29 = vmul.f32 %v455_v23, %v767_v3  ;;  %v444_v37 = vstv %s957_s26  ;;  %v400_v40 = vadd.f32 %v396_v21, %v374_v18 }
  0x68   :  { %v644_v31 = vpop.eup %643  ;;  %v419_v32 = vmul.f32 %v642_v27, %v418_v16  ;;  %655 = vtanh.f32 %v439_v20  ;;  %v462_v33 = vadd.f32 %v461_v30, %v456_v25  ;;  %v463_v34 = vadd.f32 %v461_v30, %v457_v26 }
  0x69   :  { %v646_v35 = vpop.eup %645  ;;  %v420_v36 = vmul.f32 %v644_v31, %v418_v16  ;;  %v464_v38 = vadd.f32 %v461_v30, %v458_v28  ;;  %v465_v39 = vadd.f32 %v461_v30, %v459_v29  ;;  %v470_v51 = vstv %s963_s27 }
  0x6a   :  { %v648_v0 = vpop.eup %647  ;;  %v421_v1 = vmul.f32 %v646_v35, %v418_v16  ;;  %657 = vtanh.f32 %v462_v33  ;;  %v423_v42 = vadd.f32 %v419_v32, %v397_v19 }
  0x6b   :  { %v650_v41 = vpop.eup %649  ;;  %v422_v2 = vmul.f32 %v648_v0, %v418_v16  ;;  %659 = vtanh.f32 %v463_v34  ;;  %v424_v43 = vadd.f32 %v420_v36, %v398_v22 }
  0x6c   :  { %v652_v3 = vpop.eup %651  ;;  %v445_v44 = vmul.f32 %v650_v41, %v444_v37  ;;  %661 = vtanh.f32 %v464_v38  ;;  %v425_v46 = vadd.f32 %v421_v1, %v399_v24 }
  0x6d   :  { %v654_v45 = vpop.eup %653  ;;  %v446_v47 = vmul.f32 %v652_v3, %v444_v37  ;;  %663 = vtanh.f32 %v465_v39  ;;  %v426_v49 = vadd.f32 %v422_v2, %v400_v40 }
  0x6e   :  { %v656_v48 = vpop.eup %655  ;;  %v447_v50 = vmul.f32 %v654_v45, %v444_v37  ;;  %v449_v53 = vadd.f32 %v445_v44, %v423_v42 }
  0x6f   :  { %v448_v52 = vmul.f32 %v656_v48, %v444_v37  ;;  %v450_v55 = vadd.f32 %v446_v47, %v424_v43 }
  0x70   :  { %v658_v54 = vpop.eup %657  ;;  %v451_v57 = vadd.f32 %v447_v50, %v425_v46 }
  0x71   :  { %v660_v56 = vpop.eup %659  ;;  %v471_v58 = vmul.f32 %v658_v54, %v470_v51  ;;  %v452_v60 = vadd.f32 %v448_v52, %v426_v49 }
  0x72   :  { %v662_v59 = vpop.eup %661  ;;  %v472_v61 = vmul.f32 %v660_v56, %v470_v51 }
  0x73   :  { %v664_v62 = vpop.eup %663  ;;  %v473_v63 = vmul.f32 %v662_v59, %v470_v51  ;;  %v475_v4 = vadd.f32 %v471_v58, %v449_v53 }
  0x74   :  { %v474_v5 = vmul.f32 %v664_v62, %v470_v51  ;;  %v476_v6 = vadd.f32 %v472_v61, %v450_v55 }
  0x75   :  { %v477_v7 = vadd.f32 %v473_v63, %v451_v57  ;;  %479 = vst [vmem:[%s989_s5] sm:$0xff] %v475_v4 }
  0x76   :  { %v478_v8 = vadd.f32 %v474_v5, %v452_v60  ;;  %480 = vst [vmem:[%s989_s5 + $0x8] sm:$0xff] %v476_v6 }
  0x77   :  { %481 = vst [vmem:[%s989_s5 + $0x10] sm:$0xff] %v477_v7 }
  0x78   :  { %482 = vst [vmem:[%s989_s5 + $0x18] sm:$0xff] %v478_v8 }
  0x79   :  { %487 = vsyncpa [#allocation4], 1 }
  0x7a   :  { %488 = vsyncpa [#allocation6], 1 }

</bundles_post_ra>
